<compile_context>
chip_gen: v5e
topology: v5e:2x2
jax: 0.10.0
libtpu: 0.0.40
codegen_flags: <defaults>
</compile_context>

<pallas_src>
import functools
import math

import jax
import jax.numpy as jnp
from jax.experimental import pallas as pl
from jax.experimental.pallas import tpu as pltpu


# ----------------------------- Pallas kernels -----------------------------

def _mm_bn_kernel(x_ref, w_ref, s_ref, b_ref, o_ref, *, relu):
    # (tm, K) @ (K, N) -> f32, then folded-BN scale/bias (+ ReLU) epilogue.
    y = jnp.dot(x_ref[...], w_ref[...], preferred_element_type=jnp.float32)
    y = y * s_ref[...] + b_ref[...]
    if relu:
        y = jnp.maximum(y, 0.0)
    o_ref[...] = y.astype(o_ref.dtype)


def _mm_bn_res_kernel(x_ref, w_ref, s_ref, b_ref, r_ref, o_ref, *, relu):
    # Same as above but with the bottleneck residual add fused in.
    y = jnp.dot(x_ref[...], w_ref[...], preferred_element_type=jnp.float32)
    y = y * s_ref[...] + b_ref[...] + r_ref[...].astype(jnp.float32)
    if relu:
        y = jnp.maximum(y, 0.0)
    o_ref[...] = y.astype(o_ref.dtype)


def _maxpool_kernel(p_ref, o_ref):
    # p_ref: (k*k, tm, C) stacked window taps -> elementwise max.
    o_ref[...] = jnp.max(p_ref[...], axis=0)


def _avgpool_kernel(x_ref, o_ref):
    # x_ref: (B, H*W, C) -> global average pool in f32.
    o_ref[...] = jnp.mean(x_ref[...].astype(jnp.float32), axis=1)


# ------------------------------- wrappers ----------------------------------

def _round_up(x, m):
    return (x + m - 1) // m * m


def _gemm_impl(x2d, w, scale, bias, residual, relu):
    """Tiled (M,K)@(K,N) * scale + bias [+ residual] [ReLU] in one kernel."""
    M, K = x2d.shape
    N = w.shape[1]

    # Pad K to a bf16-friendly multiple of 16 (only the 7x7x3 stem needs it).
    Kp = _round_up(K, 16)
    if Kp != K:
        x2d = jnp.pad(x2d, ((0, 0), (0, Kp - K)))
        w = jnp.pad(w, ((0, Kp - K), (0, 0)))

    # Large lane-dense row tiles (128 when possible), padded M grid.
    tm = 128 if M >= 128 else _round_up(M, 8)
    Mp = _round_up(M, tm)
    if Mp != M:
        x2d = jnp.pad(x2d, ((0, Mp - M), (0, 0)))
        if residual is not None:
            residual = jnp.pad(residual, ((0, Mp - M), (0, 0)))

    xb = x2d.astype(jnp.bfloat16)
    wb = w.astype(jnp.bfloat16)
    s2 = scale.reshape(1, N).astype(jnp.float32)
    b2 = bias.reshape(1, N).astype(jnp.float32)

    in_specs = [pl.BlockSpec((tm, Kp), lambda i: (i, 0)),
                pl.BlockSpec((Kp, N), lambda i: (0, 0)),
                pl.BlockSpec((1, N), lambda i: (0, 0)),
                pl.BlockSpec((1, N), lambda i: (0, 0))]
    args = [xb, wb, s2, b2]
    if residual is None:
        kernel = functools.partial(_mm_bn_kernel, relu=relu)
    else:
        in_specs.append(pl.BlockSpec((tm, N), lambda i: (i, 0)))
        args.append(residual.astype(jnp.bfloat16))
        kernel = functools.partial(_mm_bn_res_kernel, relu=relu)

    out = pl.pallas_call(
        kernel,
        out_shape=jax.ShapeDtypeStruct((Mp, N), jnp.bfloat16),
        grid=(Mp // tm,),
        in_specs=in_specs,
        out_specs=pl.BlockSpec((tm, N), lambda i: (i, 0)),
        compiler_params=pltpu.CompilerParams(
            dimension_semantics=("parallel",)),
    )(*args)
    return out[:M] if Mp != M else out


@functools.partial(jax.jit, static_argnames=("relu",))
def _conv_gemm(x2d, w, scale, bias, *, relu):
    return _gemm_impl(x2d, w, scale, bias, None, relu)


@functools.partial(jax.jit, static_argnames=("relu",))
def _conv_gemm_res(x2d, w, scale, bias, residual, *, relu):
    return _gemm_impl(x2d, w, scale, bias, residual, relu)


def matmul_bn_act(x2d, w, scale, bias, *, relu, residual=None):
    if residual is None:
        return _conv_gemm(x2d, w, scale, bias, relu=relu)
    return _conv_gemm_res(x2d, w, scale, bias, residual, relu=relu)


def _im2col(x, k, stride, padding):
    """NHWC -> (B, OH, OW, k*k*C) using pure slicing (data movement only)."""
    if padding:
        x = jnp.pad(x, ((0, 0), (padding, padding), (padding, padding), (0, 0)))
    Hp, Wp = x.shape[1], x.shape[2]
    OH = (Hp - k) // stride + 1
    OW = (Wp - k) // stride + 1
    cols = []
    for i in range(k):
        for j in range(k):
            cols.append(x[:, i:i + stride * OH:stride,
                          j:j + stride * OW:stride, :])
    return jnp.concatenate(cols, axis=-1), OH, OW


def conv_bn(x, w, scale, bias, *, k, stride, padding, relu, residual=None):
    """Conv + folded BN (+ residual + ReLU), lowered to a fused Pallas GEMM."""
    B, H, W, Cin = x.shape
    if k == 1:
        if stride > 1:
            x = x[:, ::stride, ::stride, :]
        OH, OW = x.shape[1], x.shape[2]
        cols = x.reshape(B * OH * OW, Cin)
    else:
        cols, OH, OW = _im2col(x, k, stride, padding)
        cols = cols.reshape(B * OH * OW, k * k * Cin)
    res2d = None if residual is None else residual.reshape(B * OH * OW, -1)
    y = matmul_bn_act(cols, w, scale, bias, relu=relu, residual=res2d)
    return y.reshape(B, OH, OW, w.shape[1])


def maxpool(x, *, k=3, stride=2, padding=1):
    B, H, W, C = x.shape
    pad_val = float(jnp.finfo(x.dtype).min)
    xp = jnp.pad(x, ((0, 0), (padding, padding), (padding, padding), (0, 0)),
                 constant_values=pad_val)
    Hp, Wp = xp.shape[1], xp.shape[2]
    OH = (Hp - k) // stride + 1
    OW = (Wp - k) // stride + 1
    pats = [xp[:, i:i + stride * OH:stride, j:j + stride * OW:stride, :]
            .reshape(B * OH * OW, C)
            for i in range(k) for j in range(k)]
    pats = jnp.stack(pats, axis=0)                       # (k*k, M, C)
    M = B * OH * OW
    tm = 128 if M % 128 == 0 else M
    out = pl.pallas_call(
        _maxpool_kernel,
        out_shape=jax.ShapeDtypeStruct((M, C), x.dtype),
        grid=(M // tm,),
        in_specs=[pl.BlockSpec((k * k, tm, C), lambda i: (0, i, 0))],
        out_specs=pl.BlockSpec((tm, C), lambda i: (i, 0)),
        compiler_params=pltpu.CompilerParams(
            dimension_semantics=("parallel",)),
    )(pats)
    return out.reshape(B, OH, OW, C)


def global_avgpool(x):
    B, H, W, C = x.shape
    return pl.pallas_call(
        _avgpool_kernel,
        out_shape=jax.ShapeDtypeStruct((B, C), jnp.float32),
    )(x.reshape(B, H * W, C))


# ------------------------- parameters / forward ---------------------------

def _he_conv(key, k, cin, cout):
    # Weight stored directly in matmul layout (k*k*cin, cout), matching the
    # (kh, kw, cin) ordering of _im2col.
    std = math.sqrt(2.0 / (k * k * cin))
    return std * jax.random.normal(key, (k * k * cin, cout), jnp.float32)


def init_resnet50_params(key):
    keys = iter(jax.random.split(key, 128))
    nk = lambda: next(keys)
    ones = lambda n: jnp.ones((n,), jnp.float32)
    zeros = lambda n: jnp.zeros((n,), jnp.float32)

    p = {'conv1_w': _he_conv(nk(), 7, 3, 64),
         'conv1_s': ones(64), 'conv1_b': zeros(64),
         'stages': []}
    cin = 64
    for width, nblocks, stride in [(64, 3, 1), (128, 4, 2),
                                   (256, 6, 2), (512, 3, 2)]:
        blocks = []
        for bi in range(nblocks):
            s = stride if bi == 0 else 1
            cout = 4 * width
            bp = {'stride': s,
                  'w1': _he_conv(nk(), 1, cin, width),
                  's1': ones(width), 'b1': zeros(width),
                  'w2': _he_conv(nk(), 3, width, width),
                  's2': ones(width), 'b2': zeros(width),
                  'w3': _he_conv(nk(), 1, width, cout),
                  's3': ones(cout), 'b3': zeros(cout)}
            if s != 1 or cin != cout:
                bp['wd'] = _he_conv(nk(), 1, cin, cout)
                bp['sd'] = ones(cout)
                bp['bd'] = zeros(cout)
            blocks.append(bp)
            cin = cout
        p['stages'].append(blocks)
    return p


def bottleneck(x, p):
    s = p['stride']
    if 'wd' in p:
        identity = conv_bn(x, p['wd'], p['sd'], p['bd'],
                           k=1, stride=s, padding=0, relu=False)
    else:
        identity = x
    y = conv_bn(x, p['w1'], p['s1'], p['b1'],
                k=1, stride=1, padding=0, relu=True)
    y = conv_bn(y, p['w2'], p['s2'], p['b2'],
                k=3, stride=s, padding=1, relu=True)
    # conv3 + BN + residual add + ReLU fused into a single Pallas kernel.
    y = conv_bn(y, p['w3'], p['s3'], p['b3'],
                k=1, stride=1, padding=0, relu=True, residual=identity)
    return y


def resnet_encoder_forward(params, x_nchw):
    # NCHW (PyTorch layout) -> NHWC so channels sit on the 128-lane axis.
    x = jnp.transpose(x_nchw, (0, 2, 3, 1)).astype(jnp.bfloat16)
    x = conv_bn(x, params['conv1_w'], params['conv1_s'], params['conv1_b'],
                k=7, stride=2, padding=3, relu=True)
    x = maxpool(x, k=3, stride=2, padding=1)
    for blocks in params['stages']:
        for bp in blocks:
            x = bottleneck(x, bp)
    feats = global_avgpool(x)                 # (B, 2048) == out.view(B, -1)
    return feats


# --------------------------------- main -----------------------------------

if __name__ == "__main__":
    key = jax.random.PRNGKey(0)
    kparams, kx = jax.random.split(key)
    params = init_resnet50_params(kparams)

    # Small but architecture-consistent input: 3-channel 64x64 images
    # (must survive the 5x stride-2 downsampling of ResNet-50).
    x = jax.random.normal(kx, (2, 3, 64, 64), jnp.float32)

    out = resnet_encoder_forward(params, x)
    out = jax.block_until_ready(out)
    assert out.shape == (2, 2048)
    assert jnp.all(jnp.isfinite(out))
    print("KERNEL_OK")
</pallas_src>

<mosaic_0001>
module attributes {stable_mosaic.version = 11 : i64} {
  func.func @_mm_bn_kernel(%arg0: i32, %arg1: memref<128x160xbf16, #tpu.memory_space<vmem>>, %arg2: memref<160x64xbf16, #tpu.memory_space<vmem>>, %arg3: memref<1x64xf32, #tpu.memory_space<vmem>>, %arg4: memref<1x64xf32, #tpu.memory_space<vmem>>, %arg5: memref<128x64xbf16, #tpu.memory_space<vmem>>) attributes {dimension_semantics = [#tpu.dimension_semantics<parallel>], iteration_bounds = array<i64: 16>, scalar_prefetch = 0 : i64, scratch_operands = 0 : i64, tpu.core_type = #tpu.core_type<tc>, window_params = [{transform_indices = @transform_0, window_bounds = array<i64: 128, 160>}, {pipeline_mode = #tpu.pipeline_mode<synchronous>, transform_indices = @transform_1, window_bounds = array<i64: 160, 64>}, {pipeline_mode = #tpu.pipeline_mode<synchronous>, transform_indices = @transform_2, window_bounds = array<i64: 1, 64>}, {pipeline_mode = #tpu.pipeline_mode<synchronous>, transform_indices = @transform_3, window_bounds = array<i64: 1, 64>}, {transform_indices = @transform_4, window_bounds = array<i64: 128, 64>}]} {
    %c0 = arith.constant 0 : index
    %c0_0 = arith.constant 0 : index
    %0 = vector.load %arg1[%c0, %c0_0] : memref<128x160xbf16, #tpu.memory_space<vmem>>, vector<128x160xbf16>
    %c0_1 = arith.constant 0 : index
    %c0_2 = arith.constant 0 : index
    %1 = vector.load %arg2[%c0_1, %c0_2] : memref<160x64xbf16, #tpu.memory_space<vmem>>, vector<160x64xbf16>
    %cst = arith.constant dense<0.000000e+00> : vector<128x64xf32>
    %2 = tpu.matmul %0, %1, %cst {dimension_numbers = #tpu.dot_dimension_numbers<[1], [0], [0], [1], [0, 0, 1, 1], [], []>} : vector<128x160xbf16>, vector<160x64xbf16>, vector<128x64xf32> -> vector<128x64xf32>
    %c0_3 = arith.constant 0 : index
    %c0_4 = arith.constant 0 : index
    %3 = vector.load %arg3[%c0_3, %c0_4] : memref<1x64xf32, #tpu.memory_space<vmem>>, vector<1x64xf32>
    %4 = vector.broadcast %3 : vector<1x64xf32> to vector<128x64xf32>
    %5 = arith.mulf %2, %4 : vector<128x64xf32>
    %c0_5 = arith.constant 0 : index
    %c0_6 = arith.constant 0 : index
    %6 = vector.load %arg4[%c0_5, %c0_6] : memref<1x64xf32, #tpu.memory_space<vmem>>, vector<1x64xf32>
    %7 = vector.broadcast %6 : vector<1x64xf32> to vector<128x64xf32>
    %8 = arith.addf %5, %7 : vector<128x64xf32>
    %cst_7 = arith.constant 0.000000e+00 : f32
    %9 = vector.broadcast %cst_7 : f32 to vector<128x64xf32>
    %10 = arith.maximumf %8, %9 : vector<128x64xf32>
    %11 = arith.truncf %10 : vector<128x64xf32> to vector<128x64xbf16>
    %c0_8 = arith.constant 0 : index
    %c0_9 = arith.constant 0 : index
    %12 = vector.load %arg5[%c0_8, %c0_9] : memref<128x64xbf16, #tpu.memory_space<vmem>>, vector<128x64xbf16>
    tpu.vector_store %arg5[%c0_8, %c0_9], %11 {strides = array<i32>} : memref<128x64xbf16, #tpu.memory_space<vmem>>, vector<128x64xbf16>,
    return
  }
  func.func @transform_0(%arg0: i32) -> (i32, i32) {
    %c0_i32 = arith.constant 0 : i32
    %c0_i32_0 = arith.constant 0 : i32
    return %arg0, %c0_i32 : i32, i32
  }
  func.func @transform_1(%arg0: i32) -> (i32, i32) {
    %c0_i32 = arith.constant 0 : i32
    %c0_i32_0 = arith.constant 0 : i32
    %c0_i32_1 = arith.constant 0 : i32
    return %c0_i32, %c0_i32_0 : i32, i32
  }
  func.func @transform_2(%arg0: i32) -> (i32, i32) {
    %c0_i32 = arith.constant 0 : i32
    %c0_i32_0 = arith.constant 0 : i32
    %c0_i32_1 = arith.constant 0 : i32
    return %c0_i32, %c0_i32_0 : i32, i32
  }
  func.func @transform_3(%arg0: i32) -> (i32, i32) {
    %c0_i32 = arith.constant 0 : i32
    %c0_i32_0 = arith.constant 0 : i32
    %c0_i32_1 = arith.constant 0 : i32
    return %c0_i32, %c0_i32_0 : i32, i32
  }
  func.func @transform_4(%arg0: i32) -> (i32, i32) {
    %c0_i32 = arith.constant 0 : i32
    %c0_i32_0 = arith.constant 0 : i32
    return %arg0, %c0_i32 : i32, i32
  }
}

</mosaic_0001>

<bundles_post_ra>
// kernel: _conv_gemm.1
= control target key start
LH: loop header
LB: loop body
LE: loop exit
PB: predicated region body
PF: predicated region fallthrough
CT: control target
= control target key end

     0   :  { %s845_s15 = smov 0   ;;  %s1017_s0 = inlined_call_operand.vmem [shape: bf16[2048,160], index: 0, kind: input, shape index: {}]   ;;  %s1018_s1 = inlined_call_operand.vmem [shape: bf16[160,64], index: 1, kind: input, shape index: {}]   ;;  %s1019_s2 = inlined_call_operand.vmem [shape: f32[1,64], index: 2, kind: input, shape index: {}]   ;;  %s1020_s3 = inlined_call_operand.vmem [shape: f32[1,64], index: 3, kind: input, shape index: {}]   ;;  %s1021_s4 = inlined_call_operand.vmem [shape: bf16[2048,64], index: 4, kind: output, shape index: {}]  }
   0x1 LB: > { %s641_s16 = sadd.s32 4294967295, %s818_s15   ;;  %p645_p0 = scmp.ge.s32.totalorder %s818_s15, 1  ;;  %s818_s15 = sphi %s845_s15, %s14_s15  }
   0x2   : > { %p164_p1 = scmp.lt.s32.totalorder %s818_s15, 17 }
   0x4   : > { %p165_p2 = pnand %p645_p0, %p164_p1 }
   0x5   : > { %s646_s21 = sshll.u32 (!%p165_p2), %s641_s16, 4 }
   0x6   : > { %168 = sbr.rel (%p165_p2) target bundleno = 243 (0xf3), region = 36  ;;  %p192_p3 = scmp.lt.s32.totalorder (!%p165_p2), %s646_s21, 255 }
   0xb   : > { %v789_v0 = vld [vmem:[%s1018_s1 + $0x38] sm:$0xff]  ;;  %v791_v1 = vld [vmem:[%s1018_s1 + $0x48] sm:$0xff]  ;;  %v788_v2 = vld [vmem:[%s1018_s1 + $0x30] sm:$0xff]  ;;  %s1023_s21 = smov (!%p192_p3, %s646_s21), 255  ;;  %vm373_vm0 = vcmask 261120   ;;  %vm568_vm1 = vcmask 519168  }
   0xc   : > { %398 = vmatpush.bf16.msra.mxu0 %v789_v0  ;;  %792 = vmatpush.bf16.msra.mxu2 %v789_v0  ;;  %v790_v3 = vld [vmem:[%s1018_s1 + $0x40] sm:$0xff]  ;;  %s765_s26 = sshll.u32 %s1023_s21, 3  ;;  %v787_v4 = vld [vmem:[%s1018_s1 + $0x28] sm:$0xff]  ;;  %v785_v12 = vld [vmem:[%s1018_s1 + $0x18] sm:$0xff]  ;;  %s650_s22 = sshll.u32 %s1023_s21, 2 }
   0xd   : > { %453 = vmatpush.bf16.msra.mxu1 %v791_v1  ;;  %800 = vmatpush.bf16.msra.mxu3 %v791_v1  ;;  %s871_s29 = scalar_lea.vmem %s1017_s0, %s765_s26  ;;  %v786_v8 = vld [vmem:[%s1018_s1 + $0x20] sm:$0xff]  ;;  %v784_v13 = vld [vmem:[%s1018_s1 + $0x10] sm:$0xff]  ;;  %v783_v17 = vld [vmem:[%s1018_s1 + $0x8] sm:$0xff]  ;;  %s947_s25 = scalar_lea.vmem %s1021_s4, %s650_s22 }
   0xe   : > { %v766_v5 = vld [vmem:[%s871_s29 + $0x4] sm:$0xf]  ;;  %v655_v6 = vld [vmem:[%s871_s29 + $0x8] sm:$0xf0]  ;;  %v776_v9 = vld [vmem:[%s871_s29 + $0x54] sm:$0xf] }
   0xf   : > { %v658_v7 = vor.u32 %v766_v5, %v655_v6  ;;  %v695_v10 = vld [vmem:[%s871_s29 + $0x58] sm:$0xf0]  ;;  %v768_v14 = vld [vmem:[%s871_s29 + $0x14] sm:$0xf]  ;;  %v778_v18 = vld [vmem:[%s871_s29 + $0x64] sm:$0xf] }
  0x10   : > { %399 = vmatpush.bf16.msra.mxu0 %v788_v2  ;;  %793 = vmatpush.bf16.msra.mxu2 %v788_v2  ;;  %v698_v11 = vor.u32 %v776_v9, %v695_v10  ;;  %v663_v15 = vld [vmem:[%s871_s29 + $0x18] sm:$0xf0]  ;;  %v703_v19 = vld [vmem:[%s871_s29 + $0x68] sm:$0xf0]  ;;  %v782_v21 = vld [vmem:[%s1018_s1] sm:$0xff] }
  0x11   : > { %454 = vmatpush.bf16.msra.mxu1 %v790_v3  ;;  %801 = vmatpush.bf16.msra.mxu3 %v790_v3  ;;  %v666_v16 = vor.u32 %v768_v14, %v663_v15  ;;  %v706_v20 = vor.u32 %v778_v18, %v703_v19  ;;  %v653_v22 = vld [vmem:[%s871_s29] sm:$0xf]  ;;  %v767_v23 = vld [vmem:[%s871_s29 + $0x4] sm:$0xf0]  ;;  %v770_v28 = vld [vmem:[%s871_s29 + $0x24] sm:$0xf] }
  0x12   : > { %v685_v24 = vld [vmem:[%s871_s29 + $0x40] sm:$0xf]  ;;  %v775_v25 = vld [vmem:[%s871_s29 + $0x44] sm:$0xf0]  ;;  %v654_v26 = vor.u32 %v767_v23, %v653_v22  ;;  %v671_v29 = vld [vmem:[%s871_s29 + $0x28] sm:$0xf0] }
  0x13   : > { %v686_v27 = vor.u32 %v775_v25, %v685_v24  ;;  %v674_v30 = vor.u32 %v770_v28, %v671_v29  ;;  %v780_v31 = vld [vmem:[%s871_s29 + $0x74] sm:$0xf]  ;;  %v711_v32 = vld [vmem:[%s871_s29 + $0x78] sm:$0xf0]  ;;  %v661_v34 = vld [vmem:[%s871_s29 + $0x10] sm:$0xf] }
  0x14   : > { %755 = vmatmul.msk.bf16.vlgmr.msra.gmra.mxu1 %vm373_vm0, %v658_v7  ;;  %400 = vmatpush.bf16.msra.mxu0 %v787_v4  ;;  %v714_v33 = vor.u32 %v780_v31, %v711_v32  ;;  %v769_v35 = vld [vmem:[%s871_s29 + $0x14] sm:$0xf0]  ;;  %v693_v36 = vld [vmem:[%s871_s29 + $0x50] sm:$0xf]  ;;  %v772_v40 = vld [vmem:[%s871_s29 + $0x34] sm:$0xf] }
  0x15   : > { %794 = vmatpush.bf16.msra.mxu2 %v787_v4  ;;  %760 = vmatmul.msk.bf16.vlgmr.msra.gmra.mxu3 %vm373_vm0, %v698_v11  ;;  %v777_v37 = vld [vmem:[%s871_s29 + $0x54] sm:$0xf0]  ;;  %v662_v38 = vor.u32 %v769_v35, %v661_v34  ;;  %v679_v41 = vld [vmem:[%s871_s29 + $0x38] sm:$0xf0]  ;;  %v669_v43 = vld [vmem:[%s871_s29 + $0x20] sm:$0xf] }
  0x16   : > { %v694_v39 = vor.u32 %v777_v37, %v693_v36  ;;  %v682_v42 = vor.u32 %v772_v40, %v679_v41  ;;  %v771_v44 = vld [vmem:[%s871_s29 + $0x24] sm:$0xf0]  ;;  %v701_v45 = vld [vmem:[%s871_s29 + $0x60] sm:$0xf]  ;;  %v774_v49 = vld [vmem:[%s871_s29 + $0x44] sm:$0xf] }
  0x17   : > { %v779_v46 = vld [vmem:[%s871_s29 + $0x64] sm:$0xf0]  ;;  %v670_v47 = vor.u32 %v771_v44, %v669_v43  ;;  %v687_v50 = vld [vmem:[%s871_s29 + $0x48] sm:$0xf0]  ;;  %v677_v52 = vld [vmem:[%s871_s29 + $0x30] sm:$0xf] }
  0x18   : > { %401 = vmatpush.bf16.msra.mxu0 %v786_v8  ;;  %v702_v48 = vor.u32 %v779_v46, %v701_v45  ;;  %v690_v51 = vor.u32 %v774_v49, %v687_v50  ;;  %v773_v53 = vld [vmem:[%s871_s29 + $0x34] sm:$0xf0]  ;;  %v709_v54 = vld [vmem:[%s871_s29 + $0x70] sm:$0xf]  ;;  %v934_v61 = vld [vmem:[%s1019_s2] ss:$0 sm:$0xff] }
  0x19   : > { %795 = vmatpush.bf16.msra.mxu2 %v786_v8  ;;  %v781_v55 = vld [vmem:[%s871_s29 + $0x74] sm:$0xf0]  ;;  %v678_v56 = vor.u32 %v773_v53, %v677_v52  ;;  %v939_v0 = vld [vmem:[%s1020_s3] ss:$0 sm:$0xff] }
  0x1a   : > { %v710_v57 = vor.u32 %v781_v55, %v709_v54 }
  0x1c   : > { %402 = vmatpush.bf16.msra.mxu0 %v785_v12 }
  0x1d   : > { %796 = vmatpush.bf16.msra.mxu2 %v785_v12 }
  0x20   : > { %403 = vmatpush.bf16.msra.mxu0 %v784_v13 }
  0x21   : > { %797 = vmatpush.bf16.msra.mxu2 %v784_v13 }
  0x24   : > { %756 = vmatmul.msk.bf16.gmra.mxu1 %vm373_vm0, %v666_v16  ;;  %404 = vmatpush.bf16.msra.mxu0 %v783_v17 }
  0x25   : > { %798 = vmatpush.bf16.msra.mxu2 %v783_v17  ;;  %761 = vmatmul.msk.bf16.gmra.mxu3 %vm373_vm0, %v706_v20 }
  0x28   : > { %405 = vmatpush.bf16.msra.mxu0 %v782_v21 }
  0x29   : > { %799 = vmatpush.bf16.msra.mxu2 %v782_v21 }
  0x2b   : > { %406 = vmatmul.bf16.vlgmr.msra.gmra.mxu0 %v654_v26 }
  0x2c   : > { %426 = vmatmul.bf16.vlgmr.msra.gmra.mxu2 %v686_v27 }
  0x34   : > { %757 = vmatmul.msk.bf16.gmra.mxu1 %vm373_vm0, %v674_v30 }
  0x35   : > { %762 = vmatmul.msk.bf16.gmra.mxu3 %vm373_vm0, %v714_v33 }
  0x3b   : > { %411 = vmatmul.bf16.gmra.mxu0 %v662_v38 }
  0x3c   : > { %431 = vmatmul.bf16.gmra.mxu2 %v694_v39 }
  0x44   : > { %758 = vmatmul.msk.bf16.gmra.mxu1 %vm373_vm0, %v682_v42 }
  0x4b   : > { %416 = vmatmul.bf16.gmra.mxu0 %v670_v47 }
  0x4c   : > { %436 = vmatmul.bf16.gmra.mxu2 %v702_v48 }
  0x54   : > { %759 = vmatmul.msk.bf16.gmra.mxu1 %vm373_vm0, %v690_v51 }
  0x5b   : > { %421 = vmatmul.bf16.gmra.mxu0 %v678_v56 }
  0x5c   : > { %441 = vmatmul.bf16.gmra.mxu2 %v710_v57 }
  0x91   : > { %v456_v58 = vpop.f32.mrf.mxu1 }
  0x98   : > { %v481_v12 = vpop.f32.mrf.mxu3 }
  0x99   : > { %v458_v59 = vpop.f32.mrf.mxu1 }
  0xa0   : > { %v483_v23 = vpop.f32.mrf.mxu3 }
  0xa1   : > { %v461_v60 = vpop.f32.mrf.mxu1 }
  0xa8   : > { %v407_v62 = vpop.f32.mrf.mxu0  ;;  %v486_v40 = vpop.f32.mrf.mxu3 }
  0xa9   : > { %v457_v63 = vadd.f32 %v456_v58, %v407_v62  ;;  %v463_v1 = vpop.f32.mrf.mxu1 }
  0xab   : > { %v500_v2 = vmul.f32 %v934_v61, %v457_v63 }
  0xad   : > { %v520_v3 = vadd.f32 %v939_v0, %v500_v2 }
  0xaf   : > { %v536_v4 = vmax.f32 %v520_v3, 0.0  ;;  %v427_v5 = vpop.f32.mrf.mxu2 }
  0xb0   : > { %v409_v6 = vpop.f32.mrf.mxu0  ;;  %v488_v58 = vpop.f32.mrf.mxu3 }
  0xb1   : > { %v552_v7 = vpack.c.bf16 %v536_v4, %v536_v4  ;;  %v459_v8 = vadd.f32 %v458_v59, %v409_v6  ;;  %v466_v9 = vpop.f32.mrf.mxu1 }
  0xb3   : > { %569 = vst.msk [vmem:[%s947_s25] sm:$0xf] %vm568_vm1, %v552_v7  ;;  %v501_v10 = vmul.f32 %v934_v61, %v459_v8 }
  0xb5   : > { %v521_v11 = vadd.f32 %v939_v0, %v501_v10 }
  0xb7   : > { %v537_v13 = vmax.f32 %v521_v11, 0.0  ;;  %v953_v14 = vpop.f32.mrf.mxu2 }
  0xb8   : > { %v412_v15 = vpop.f32.mrf.mxu0 }
  0xb9   : > { %v553_v16 = vpack.c.bf16 %v537_v13, %v537_v13  ;;  %v462_v17 = vadd.f32 %v461_v60, %v412_v15  ;;  %v468_v18 = vpop.f32.mrf.mxu1 }
  0xbb   : > { %570 = vst.msk [vmem:[%s947_s25 + $0x4] sm:$0xf] %vm568_vm1, %v553_v16  ;;  %v502_v19 = vmul.f32 %v934_v61, %v462_v17 }
  0xbd   : > { %v522_v20 = vadd.f32 %v939_v0, %v502_v19  ;;  %v491_v19 = vpop.f32.mrf.mxu3 }
  0xbf   : > { %v538_v21 = vmax.f32 %v522_v20, 0.0  ;;  %v432_v22 = vpop.f32.mrf.mxu2 }
  0xc0   : > { %v482_v24 = vadd.f32 %v481_v12, %v432_v22  ;;  %v414_v25 = vpop.f32.mrf.mxu0 }
  0xc1   : > { %v554_v26 = vpack.c.bf16 %v538_v21, %v538_v21  ;;  %v464_v27 = vadd.f32 %v463_v1, %v414_v25  ;;  %v471_v28 = vpop.f32.mrf.mxu1 }
  0xc2   : > { %v510_v29 = vmul.f32 %v934_v61, %v482_v24 }
  0xc3   : > { %571 = vst.msk [vmem:[%s947_s25 + $0x8] sm:$0xf] %vm568_vm1, %v554_v26  ;;  %v503_v30 = vmul.f32 %v934_v61, %v464_v27 }
  0xc4   : > { %v530_v31 = vadd.f32 %v939_v0, %v510_v29 }
  0xc5   : > { %v523_v32 = vadd.f32 %v939_v0, %v503_v30 }
  0xc6   : > { %v546_v33 = vmax.f32 %v530_v31, 0.0 }
  0xc7   : > { %v539_v34 = vmax.f32 %v523_v32, 0.0  ;;  %v434_v35 = vpop.f32.mrf.mxu2 }
  0xc8   : > { %v562_v36 = vpack.c.bf16 %v546_v33, %v546_v33  ;;  %v484_v37 = vadd.f32 %v483_v23, %v434_v35  ;;  %v417_v38 = vpop.f32.mrf.mxu0 }
  0xc9   : > { %v555_v39 = vpack.c.bf16 %v539_v34, %v539_v34  ;;  %v467_v41 = vadd.f32 %v466_v9, %v417_v38  ;;  %v473_v42 = vpop.f32.mrf.mxu1 }
  0xca   : > { %579 = vst.msk [vmem:[%s947_s25 + $0x28] sm:$0xf] %vm568_vm1, %v562_v36  ;;  %v511_v43 = vmul.f32 %v934_v61, %v484_v37  ;;  %v493_v36 = vpop.f32.mrf.mxu3 }
  0xcb   : > { %572 = vst.msk [vmem:[%s947_s25 + $0xc] sm:$0xf] %vm568_vm1, %v555_v39  ;;  %v504_v44 = vmul.f32 %v934_v61, %v467_v41 }
  0xcc   : > { %v531_v45 = vadd.f32 %v939_v0, %v511_v43 }
  0xcd   : > { %v524_v46 = vadd.f32 %v939_v0, %v504_v44 }
  0xce   : > { %v547_v47 = vmax.f32 %v531_v45, 0.0 }
  0xcf   : > { %v540_v48 = vmax.f32 %v524_v46, 0.0  ;;  %v437_v49 = vpop.f32.mrf.mxu2 }
  0xd0   : > { %v563_v50 = vpack.c.bf16 %v547_v47, %v547_v47  ;;  %v487_v51 = vadd.f32 %v486_v40, %v437_v49  ;;  %v419_v52 = vpop.f32.mrf.mxu0 }
  0xd1   : > { %v556_v53 = vpack.c.bf16 %v540_v48, %v540_v48  ;;  %v469_v54 = vadd.f32 %v468_v18, %v419_v52  ;;  %v476_v55 = vpop.f32.mrf.mxu1 }
  0xd2   : > { %580 = vst.msk [vmem:[%s947_s25 + $0x2c] sm:$0xf] %vm568_vm1, %v563_v50  ;;  %v512_v56 = vmul.f32 %v934_v61, %v487_v51  ;;  %v477_v57 = vadd.f32 %v476_v55, %v427_v5 }
  0xd3   : > { %573 = vst.msk [vmem:[%s947_s25 + $0x10] sm:$0xf] %vm568_vm1, %v556_v53  ;;  %v505_v59 = vmul.f32 %v934_v61, %v469_v54 }
  0xd4   : > { %v532_v60 = vadd.f32 %v939_v0, %v512_v56  ;;  %v508_v62 = vmul.f32 %v934_v61, %v477_v57 }
  0xd5   : > { %v525_v63 = vadd.f32 %v939_v0, %v505_v59 }
  0xd6   : > { %v548_v1 = vmax.f32 %v532_v60, 0.0  ;;  %v528_v2 = vadd.f32 %v939_v0, %v508_v62 }
  0xd7   : > { %v541_v3 = vmax.f32 %v525_v63, 0.0  ;;  %v439_v4 = vpop.f32.mrf.mxu2 }
  0xd8   : > { %v564_v5 = vpack.c.bf16 %v548_v1, %v548_v1  ;;  %v544_v6 = vmax.f32 %v528_v2, 0.0  ;;  %v489_v7 = vadd.f32 %v488_v58, %v439_v4  ;;  %v422_v8 = vpop.f32.mrf.mxu0 }
  0xd9   : > { %v557_v9 = vpack.c.bf16 %v541_v3, %v541_v3  ;;  %v472_v10 = vadd.f32 %v471_v28, %v422_v8  ;;  %v478_v11 = vpop.f32.mrf.mxu1 }
  0xda   : > { %581 = vst.msk [vmem:[%s947_s25 + $0x30] sm:$0xf] %vm568_vm1, %v564_v5  ;;  %v560_v12 = vpack.c.bf16 %v544_v6, %v544_v6  ;;  %v513_v13 = vmul.f32 %v934_v61, %v489_v7  ;;  %v479_v15 = vadd.f32 %v478_v11, %v953_v14 }
  0xdb   : > { %574 = vst.msk [vmem:[%s947_s25 + $0x14] sm:$0xf] %vm568_vm1, %v557_v9  ;;  %v506_v16 = vmul.f32 %v934_v61, %v472_v10 }
  0xdc   : > { %577 = vst.msk [vmem:[%s947_s25 + $0x20] sm:$0xf] %vm568_vm1, %v560_v12  ;;  %v533_v17 = vadd.f32 %v939_v0, %v513_v13  ;;  %v509_v18 = vmul.f32 %v934_v61, %v479_v15 }
  0xdd   : > { %v526_v20 = vadd.f32 %v939_v0, %v506_v16 }
  0xde   : > { %v549_v21 = vmax.f32 %v533_v17, 0.0  ;;  %v529_v22 = vadd.f32 %v939_v0, %v509_v18 }
  0xdf   : > { %v542_v14 = vmax.f32 %v526_v20, 0.0  ;;  %v442_v23 = vpop.f32.mrf.mxu2 }
  0xe0   : > { %v565_v24 = vpack.c.bf16 %v549_v21, %v549_v21  ;;  %v545_v25 = vmax.f32 %v529_v22, 0.0  ;;  %v492_v26 = vadd.f32 %v491_v19, %v442_v23  ;;  %v424_v27 = vpop.f32.mrf.mxu0 }
  0xe1   : > { %v558_v28 = vpack.c.bf16 %v542_v14, %v542_v14  ;;  %v474_v29 = vadd.f32 %v473_v42, %v424_v27 }
  0xe2   : > { %582 = vst.msk [vmem:[%s947_s25 + $0x34] sm:$0xf] %vm568_vm1, %v565_v24  ;;  %v561_v30 = vpack.c.bf16 %v545_v25, %v545_v25  ;;  %v514_v31 = vmul.f32 %v934_v61, %v492_v26 }
  0xe3   : > { %575 = vst.msk [vmem:[%s947_s25 + $0x18] sm:$0xf] %vm568_vm1, %v558_v28  ;;  %v507_v32 = vmul.f32 %v934_v61, %v474_v29 }
  0xe4   : > { %578 = vst.msk [vmem:[%s947_s25 + $0x24] sm:$0xf] %vm568_vm1, %v561_v30  ;;  %v534_v33 = vadd.f32 %v939_v0, %v514_v31 }
  0xe5   : > { %v527_v34 = vadd.f32 %v939_v0, %v507_v32 }
  0xe6   : > { %v550_v35 = vmax.f32 %v534_v33, 0.0 }
  0xe7   : > { %v543_v37 = vmax.f32 %v527_v34, 0.0  ;;  %v444_v38 = vpop.f32.mrf.mxu2 }
  0xe8   : > { %v566_v39 = vpack.c.bf16 %v550_v35, %v550_v35  ;;  %v494_v40 = vadd.f32 %v493_v36, %v444_v38 }
  0xe9   : > { %v559_v41 = vpack.c.bf16 %v543_v37, %v543_v37 }
  0xea   : > { %583 = vst.msk [vmem:[%s947_s25 + $0x38] sm:$0xf] %vm568_vm1, %v566_v39  ;;  %v515_v42 = vmul.f32 %v934_v61, %v494_v40 }
  0xeb   : > { %576 = vst.msk [vmem:[%s947_s25 + $0x1c] sm:$0xf] %vm568_vm1, %v559_v41 }
  0xec   : > { %v535_v43 = vadd.f32 %v939_v0, %v515_v42 }
  0xee   : > { %v551_v44 = vmax.f32 %v535_v43, 0.0 }
  0xf0   : > { %v567_v45 = vpack.c.bf16 %v551_v44, %v551_v44 }
  0xf2   : > { %584 = vst.msk [vmem:[%s947_s25 + $0x3c] sm:$0xf] %vm568_vm1, %v567_v45 }
  0xf3 PF: > { %s14_s15 = sadd.s32 1, %s818_s15  }
  0xf4   : > { %p11_p4 = scmp.ge.s32.totalorder %s14_s15, 18  }
  0xf6   :  { %13 = sbr.rel (!%p11_p4) target bundleno = 1 (0x1), region = 66 }

</bundles_post_ra>
